<compile_context>
chip_gen: v7x
topology: tpu7x:2x2x1
jax: 0.10.0
libtpu: 0.0.40
codegen_flags: <defaults>
</compile_context>

<pallas_src>
import functools

import jax
import jax.numpy as jnp
from jax.experimental import pallas as pl
from jax.experimental.pallas import tpu as pltpu


def _conv3x3_lrelu_kernel(x_ref, w_ref, o_ref, col_ref, *,
                          batch_tile, C_in, C_out, H, Wp, negative_slope):
    """One grid step = `batch_tile` images.

    x_ref  : (batch_tile, C_in, (H+3)*Wp)  bf16  zero-padded, spatially flattened input
    w_ref  : (C_out, 9*C_in)               bf16  taps, column index = (kh*3+kw)*C_in + c
    o_ref  : (batch_tile, C_out, H*Wp)     f32   lane-dense output (padded width, cropped in wrapper)
    col_ref: (9*C_in, H*Wp)                bf16  im2col scratch (VMEM)
    """
    n_out = H * Wp
    for b in range(batch_tile):
        # im2col: on the W-padded flattened image, tap (kh,kw) of a stride-1 conv is a
        # contiguous lane-shifted slice.  9 slice-copies into scratch, then one matmul.
        for kh in range(3):
            for kw in range(3):
                tap = kh * 3 + kw
                s = kh * Wp + kw
                col_ref[tap * C_in:(tap + 1) * C_in, :] = x_ref[b, :, s:s + n_out]
        # (C_out, 9*C_in) @ (9*C_in, H*Wp) -> (C_out, H*Wp) on the MXU, f32 accumulation.
        acc = jnp.dot(w_ref[...], col_ref[...], preferred_element_type=jnp.float32)
        # LeakyReLU(negative_slope) on the VPU, lane-dense.
        out = jnp.where(acc > 0, acc, negative_slope * acc)
        o_ref[b] = out.astype(o_ref.dtype)


def _pick_batch_tile(N, per_image_bytes, budget_bytes):
    """Largest divisor of N that fits the VMEM budget while keeping >=2 grid steps
    (v7x has 2 TensorCores; the grid axis is marked 'parallel')."""
    best = 1
    for bt in range(1, N + 1):
        if N % bt:
            continue
        if bt * per_image_bytes > budget_bytes:
            continue
        if N >= 2 and N // bt < 2:
            continue
        best = bt
    return best


def conv2d_leaky_relu(x_nchw, weight_oihw, negative_slope=0.1, batch_tile=None):
    """Forward pass of the Conv2d module (kernel_size=3, stride=1, pad=1, no bias).

    x_nchw      : (N, C_in, H, W) float32
    weight_oihw : (C_out, C_in, 3, 3) float32   (PyTorch weight layout)
    returns     : (N, C_out, H, W) float32
    """
    N, C_in, H, W = x_nchw.shape
    C_out = weight_oihw.shape[0]
    Wp = W + 2                 # padded width (also the output "padded width" we crop later)
    n_out = H * Wp             # lane-dense flattened output length per image
    Lin = (H + 3) * Wp         # top halo row + bottom halo row + 1 extra zero row so every
                               # flat tap shift (max 2*Wp + 2) stays in bounds.

    # Glue (plain JAX): bf16 cast, spatial zero-pad, flatten padded spatial.
    # Channels stay first end-to-end: no input or output transpose is needed.
    x_pad = jnp.pad(x_nchw.astype(jnp.bfloat16), ((0, 0), (0, 0), (1, 2), (1, 1)))
    x_flat = x_pad.reshape(N, C_in, Lin)
    # Weight: OIHW -> (C_out, 9*C_in), tap-major columns to match the im2col row order.
    w_mat = jnp.transpose(weight_oihw, (0, 2, 3, 1)).reshape(C_out, 9 * C_in)
    w_mat = w_mat.astype(jnp.bfloat16)

    # VMEM sizing: double-buffered input + output per image, plus weights + im2col scratch.
    per_image = 2 * C_in * Lin * 2 + 2 * C_out * n_out * 4
    fixed = 2 * C_out * 9 * C_in * 2 + 9 * C_in * n_out * 2
    budget = 12 * 1024 * 1024
    if batch_tile is None:
        batch_tile = _pick_batch_tile(N, per_image, max(budget - fixed, per_image))
    assert N % batch_tile == 0, (N, batch_tile)
    vmem_limit = int(min(48 * 1024 * 1024,
                         max(32 * 1024 * 1024, 2 * (batch_tile * per_image + fixed))))

    kernel = functools.partial(
        _conv3x3_lrelu_kernel,
        batch_tile=batch_tile, C_in=C_in, C_out=C_out, H=H, Wp=Wp,
        negative_slope=negative_slope)

    out_flat = pl.pallas_call(
        kernel,
        out_shape=jax.ShapeDtypeStruct((N, C_out, n_out), jnp.float32),
        grid_spec=pltpu.PrefetchScalarGridSpec(
            num_scalar_prefetch=0,
            grid=(N // batch_tile,),
            in_specs=[
                pl.BlockSpec((batch_tile, C_in, Lin), lambda n: (n, 0, 0)),
                # Constant block index -> weights are fetched once, not per step.
                pl.BlockSpec((C_out, 9 * C_in), lambda n: (0, 0)),
            ],
            out_specs=pl.BlockSpec((batch_tile, C_out, n_out), lambda n: (n, 0, 0)),
            scratch_shapes=[pltpu.VMEM((9 * C_in, n_out), jnp.bfloat16)],
        ),
        compiler_params=pltpu.CompilerParams(
            dimension_semantics=("parallel",),
            vmem_limit_bytes=vmem_limit),
    )(x_flat, w_mat)

    # Drop the 2 garbage columns created by the flat-shift trick; result is already NCHW.
    out = out_flat.reshape(N, C_out, H, Wp)[:, :, :, :W]
    return out


def init_conv_weight(key, out_channels, in_channels, kernel_size=3):
    """Deterministic 'kaiming_uniform' init matching PyTorch Conv2d default:
    uniform(-b, b) with b = 1/sqrt(fan_in)."""
    fan_in = in_channels * kernel_size * kernel_size
    bound = 1.0 / jnp.sqrt(jnp.float32(fan_in))
    return jax.random.uniform(
        key, (out_channels, in_channels, kernel_size, kernel_size),
        dtype=jnp.float32, minval=-bound, maxval=bound)


if __name__ == "__main__":
    key = jax.random.PRNGKey(0)
    kx, kw = jax.random.split(key)

    N, C_in, H, W = 2, 4, 16, 16
    C_out = 8

    x = jax.random.normal(kx, (N, C_in, H, W), dtype=jnp.float32)
    weight = init_conv_weight(kw, C_out, C_in, kernel_size=3)

    y = conv2d_leaky_relu(x, weight, negative_slope=0.1)
    y = jax.block_until_ready(y)
    assert y.shape == (N, C_out, H, W), y.shape

    # Reference: same bf16-rounded operands, f32 conv at highest precision
    # (kernel uses bf16 operands with f32 accumulation).
    x_r = x.astype(jnp.bfloat16).astype(jnp.float32)
    w_r = weight.astype(jnp.bfloat16).astype(jnp.float32)
    ref = jax.lax.conv_general_dilated(
        x_r, w_r, window_strides=(1, 1), padding=((1, 1), (1, 1)),
        dimension_numbers=("NCHW", "OIHW", "NCHW"),
        precision=jax.lax.Precision.HIGHEST)
    ref = jnp.where(ref > 0, ref, 0.1 * ref)
    max_err = float(jnp.max(jnp.abs(y - ref)))
    assert jnp.allclose(y, ref, rtol=1e-2, atol=1e-2), max_err

    print("KERNEL_OK")
</pallas_src>

<mosaic_0001>
module attributes {stable_mosaic.version = 11 : i64} {
  func.func @_conv3x3_lrelu_kernel(%arg0: i32, %arg1: memref<1x4x342xbf16, #tpu.memory_space<vmem>>, %arg2: memref<8x36xbf16, #tpu.memory_space<vmem>>, %arg3: memref<1x8x288xf32, #tpu.memory_space<vmem>>, %arg4: memref<36x288xbf16, #tpu.memory_space<vmem>>) attributes {dimension_semantics = [#tpu.dimension_semantics<parallel>], iteration_bounds = array<i64: 2>, scalar_prefetch = 0 : i64, scratch_operands = 1 : i64, tpu.core_type = #tpu.core_type<tc>, window_params = [{transform_indices = @transform_0, window_bounds = array<i64: 1, 4, 342>}, {pipeline_mode = #tpu.pipeline_mode<synchronous>, transform_indices = @transform_1, window_bounds = array<i64: 8, 36>}, {transform_indices = @transform_2, window_bounds = array<i64: 1, 8, 288>}]} {
    %c0 = arith.constant 0 : index
    %c0_0 = arith.constant 0 : index
    %c0_1 = arith.constant 0 : index
    %0 = vector.load %arg1[%c0, %c0_0, %c0_1] : memref<1x4x342xbf16, #tpu.memory_space<vmem>>, vector<1x4x288xbf16>
    %1 = vector.shape_cast %0 : vector<1x4x288xbf16> to vector<4x288xbf16>
    %c0_2 = arith.constant 0 : index
    %c0_3 = arith.constant 0 : index
    %2 = vector.load %arg4[%c0_2, %c0_3] : memref<36x288xbf16, #tpu.memory_space<vmem>>, vector<4x288xbf16>
    tpu.vector_store %arg4[%c0_2, %c0_3], %1 {strides = array<i32>} : memref<36x288xbf16, #tpu.memory_space<vmem>>, vector<4x288xbf16>,
    %c0_4 = arith.constant 0 : index
    %c0_5 = arith.constant 0 : index
    %c1 = arith.constant 1 : index
    %3 = vector.load %arg1[%c0_4, %c0_5, %c1] : memref<1x4x342xbf16, #tpu.memory_space<vmem>>, vector<1x4x288xbf16>
    %4 = vector.shape_cast %3 : vector<1x4x288xbf16> to vector<4x288xbf16>
    %c4 = arith.constant 4 : index
    %c0_6 = arith.constant 0 : index
    %5 = vector.load %arg4[%c4, %c0_6] : memref<36x288xbf16, #tpu.memory_space<vmem>>, vector<4x288xbf16>
    tpu.vector_store %arg4[%c4, %c0_6], %4 {strides = array<i32>} : memref<36x288xbf16, #tpu.memory_space<vmem>>, vector<4x288xbf16>,
    %c0_7 = arith.constant 0 : index
    %c0_8 = arith.constant 0 : index
    %c2 = arith.constant 2 : index
    %6 = vector.load %arg1[%c0_7, %c0_8, %c2] : memref<1x4x342xbf16, #tpu.memory_space<vmem>>, vector<1x4x288xbf16>
    %7 = vector.shape_cast %6 : vector<1x4x288xbf16> to vector<4x288xbf16>
    %c8 = arith.constant 8 : index
    %c0_9 = arith.constant 0 : index
    %8 = vector.load %arg4[%c8, %c0_9] : memref<36x288xbf16, #tpu.memory_space<vmem>>, vector<4x288xbf16>
    tpu.vector_store %arg4[%c8, %c0_9], %7 {strides = array<i32>} : memref<36x288xbf16, #tpu.memory_space<vmem>>, vector<4x288xbf16>,
    %c0_10 = arith.constant 0 : index
    %c0_11 = arith.constant 0 : index
    %c18 = arith.constant 18 : index
    %9 = vector.load %arg1[%c0_10, %c0_11, %c18] : memref<1x4x342xbf16, #tpu.memory_space<vmem>>, vector<1x4x288xbf16>
    %10 = vector.shape_cast %9 : vector<1x4x288xbf16> to vector<4x288xbf16>
    %c12 = arith.constant 12 : index
    %c0_12 = arith.constant 0 : index
    %11 = vector.load %arg4[%c12, %c0_12] : memref<36x288xbf16, #tpu.memory_space<vmem>>, vector<4x288xbf16>
    tpu.vector_store %arg4[%c12, %c0_12], %10 {strides = array<i32>} : memref<36x288xbf16, #tpu.memory_space<vmem>>, vector<4x288xbf16>,
    %c0_13 = arith.constant 0 : index
    %c0_14 = arith.constant 0 : index
    %c19 = arith.constant 19 : index
    %12 = vector.load %arg1[%c0_13, %c0_14, %c19] : memref<1x4x342xbf16, #tpu.memory_space<vmem>>, vector<1x4x288xbf16>
    %13 = vector.shape_cast %12 : vector<1x4x288xbf16> to vector<4x288xbf16>
    %c16 = arith.constant 16 : index
    %c0_15 = arith.constant 0 : index
    %14 = vector.load %arg4[%c16, %c0_15] : memref<36x288xbf16, #tpu.memory_space<vmem>>, vector<4x288xbf16>
    tpu.vector_store %arg4[%c16, %c0_15], %13 {strides = array<i32>} : memref<36x288xbf16, #tpu.memory_space<vmem>>, vector<4x288xbf16>,
    %c0_16 = arith.constant 0 : index
    %c0_17 = arith.constant 0 : index
    %c20 = arith.constant 20 : index
    %15 = vector.load %arg1[%c0_16, %c0_17, %c20] : memref<1x4x342xbf16, #tpu.memory_space<vmem>>, vector<1x4x288xbf16>
    %16 = vector.shape_cast %15 : vector<1x4x288xbf16> to vector<4x288xbf16>
    %c20_18 = arith.constant 20 : index
    %c0_19 = arith.constant 0 : index
    %17 = vector.load %arg4[%c20_18, %c0_19] : memref<36x288xbf16, #tpu.memory_space<vmem>>, vector<4x288xbf16>
    tpu.vector_store %arg4[%c20_18, %c0_19], %16 {strides = array<i32>} : memref<36x288xbf16, #tpu.memory_space<vmem>>, vector<4x288xbf16>,
    %c0_20 = arith.constant 0 : index
    %c0_21 = arith.constant 0 : index
    %c36 = arith.constant 36 : index
    %18 = vector.load %arg1[%c0_20, %c0_21, %c36] : memref<1x4x342xbf16, #tpu.memory_space<vmem>>, vector<1x4x288xbf16>
    %19 = vector.shape_cast %18 : vector<1x4x288xbf16> to vector<4x288xbf16>
    %c24 = arith.constant 24 : index
    %c0_22 = arith.constant 0 : index
    %20 = vector.load %arg4[%c24, %c0_22] : memref<36x288xbf16, #tpu.memory_space<vmem>>, vector<4x288xbf16>
    tpu.vector_store %arg4[%c24, %c0_22], %19 {strides = array<i32>} : memref<36x288xbf16, #tpu.memory_space<vmem>>, vector<4x288xbf16>,
    %c0_23 = arith.constant 0 : index
    %c0_24 = arith.constant 0 : index
    %c37 = arith.constant 37 : index
    %21 = vector.load %arg1[%c0_23, %c0_24, %c37] : memref<1x4x342xbf16, #tpu.memory_space<vmem>>, vector<1x4x288xbf16>
    %22 = vector.shape_cast %21 : vector<1x4x288xbf16> to vector<4x288xbf16>
    %c28 = arith.constant 28 : index
    %c0_25 = arith.constant 0 : index
    %23 = vector.load %arg4[%c28, %c0_25] : memref<36x288xbf16, #tpu.memory_space<vmem>>, vector<4x288xbf16>
    tpu.vector_store %arg4[%c28, %c0_25], %22 {strides = array<i32>} : memref<36x288xbf16, #tpu.memory_space<vmem>>, vector<4x288xbf16>,
    %c0_26 = arith.constant 0 : index
    %c0_27 = arith.constant 0 : index
    %c38 = arith.constant 38 : index
    %24 = vector.load %arg1[%c0_26, %c0_27, %c38] : memref<1x4x342xbf16, #tpu.memory_space<vmem>>, vector<1x4x288xbf16>
    %25 = vector.shape_cast %24 : vector<1x4x288xbf16> to vector<4x288xbf16>
    %c32 = arith.constant 32 : index
    %c0_28 = arith.constant 0 : index
    %26 = vector.load %arg4[%c32, %c0_28] : memref<36x288xbf16, #tpu.memory_space<vmem>>, vector<4x288xbf16>
    tpu.vector_store %arg4[%c32, %c0_28], %25 {strides = array<i32>} : memref<36x288xbf16, #tpu.memory_space<vmem>>, vector<4x288xbf16>,
    %c0_29 = arith.constant 0 : index
    %c0_30 = arith.constant 0 : index
    %27 = vector.load %arg2[%c0_29, %c0_30] : memref<8x36xbf16, #tpu.memory_space<vmem>>, vector<8x36xbf16>
    %c0_31 = arith.constant 0 : index
    %c0_32 = arith.constant 0 : index
    %28 = vector.load %arg4[%c0_31, %c0_32] : memref<36x288xbf16, #tpu.memory_space<vmem>>, vector<36x288xbf16>
    %cst = arith.constant dense<0.000000e+00> : vector<8x288xf32>
    %29 = tpu.matmul %27, %28, %cst {dimension_numbers = #tpu.dot_dimension_numbers<[1], [0], [0], [1], [0, 0, 1, 1], [], []>} : vector<8x36xbf16>, vector<36x288xbf16>, vector<8x288xf32> -> vector<8x288xf32>
    %cst_33 = arith.constant 0.000000e+00 : f32
    %30 = vector.broadcast %cst_33 : f32 to vector<8x288xf32>
    %31 = arith.cmpf ogt, %29, %30 : vector<8x288xf32>
    %cst_34 = arith.constant 1.000000e-01 : f32
    %32 = vector.broadcast %cst_34 : f32 to vector<8x288xf32>
    %33 = arith.mulf %32, %29 : vector<8x288xf32>
    %34 = arith.select %31, %29, %33 : vector<8x288xi1>, vector<8x288xf32>
    %c0_35 = arith.constant 0 : index
    %c0_36 = arith.constant 0 : index
    %c0_37 = arith.constant 0 : index
    %35 = vector.load %arg3[%c0_35, %c0_36, %c0_37] : memref<1x8x288xf32, #tpu.memory_space<vmem>>, vector<1x8x288xf32>
    %36 = vector.shape_cast %35 : vector<1x8x288xf32> to vector<8x288xf32>
    %37 = vector.shape_cast %34 : vector<8x288xf32> to vector<1x8x288xf32>
    tpu.vector_store %arg3[%c0_35, %c0_36, %c0_37], %37 {strides = array<i32>} : memref<1x8x288xf32, #tpu.memory_space<vmem>>, vector<1x8x288xf32>,
    return
  }
  func.func @transform_0(%arg0: i32) -> (i32, i32, i32) {
    %c0_i32 = arith.constant 0 : i32
    %c0_i32_0 = arith.constant 0 : i32
    %c0_i32_1 = arith.constant 0 : i32
    return %arg0, %c0_i32, %c0_i32_0 : i32, i32, i32
  }
  func.func @transform_1(%arg0: i32) -> (i32, i32) {
    %c0_i32 = arith.constant 0 : i32
    %c0_i32_0 = arith.constant 0 : i32
    %c0_i32_1 = arith.constant 0 : i32
    return %c0_i32, %c0_i32_0 : i32, i32
  }
  func.func @transform_2(%arg0: i32) -> (i32, i32, i32) {
    %c0_i32 = arith.constant 0 : i32
    %c0_i32_0 = arith.constant 0 : i32
    %c0_i32_1 = arith.constant 0 : i32
    return %arg0, %c0_i32, %c0_i32_0 : i32, i32, i32
  }
}

</mosaic_0001>

<bundles_post_ra>
// kernel: tpu_custom_call.1
= control target key start
LH: loop header
LB: loop body
LE: loop exit
PB: predicated region body
PF: predicated region fallthrough
CT: control target
= control target key end

     0   :  { %7 = vsyncpa [#allocation4], 0  ;;  %s1235_s0 = inlined_call_operand.hbm [shape: bf16[2,4,342], index: 0, kind: input, shape index: {}]   ;;  %s1236_s1 = inlined_call_operand.hbm [shape: bf16[8,36], index: 1, kind: input, shape index: {}]   ;;  %s1237_s2 = inlined_call_operand.hbm [shape: f32[2,8,288], index: 2, kind: output, shape index: {}]  }
   0x1   :  { %9 = vsyncpa [#allocation4 + $0x1], 0 }
   0x2   :  { %10 = vsyncpa [#allocation7], 0 }
   0x3   :  { %11 = vsyncpa [#allocation5], 0 }
   0x4   :  { %13 = vsyncpa [#allocation5 + $0x1], 0  ;;  %s982_s9 = smov 0   ;;  %s984_s10 = smov 0  }
   0x5   :  { %s986_s11 = smov 0   ;;  %s988_s12 = smov 0  }
   0x6 LB: > { %s1003_s13 = sadd.s32 4294967295, %s950_s12   ;;  %s692_s14 = sadd.s32 4294967294, %s950_s12   ;;  %s950_s12 = sphi %s988_s12, %s1261_s12   ;;  %s946_s11 = sphi %s986_s11, %s1260_s11   ;;  %s942_s10 = sphi %s984_s10, %s1259_s10   ;;  %s938_s9 = sphi %s982_s9, %s1258_s9  }
   0x7   : > { %p39_p0 = scmp.ne.s32.totalorder %s942_s10, %s938_s9  ;;  %p1238_p1 = scmp.eq.s32.totalorder %s1003_s13, 0 }
   0x8   : > { %p90_p3 = scmp.eq.s32.totalorder %s692_s14, 1  ;;  %p693_p5 = scmp.ge.s32.totalorder %s950_s12, 1 }
   0x9   : > { %p1012_p4 = por %p1238_p1, %p39_p0  ;;  %p97_p7 = scmp.lt.s32.totalorder %s950_s12, 3 }
   0xa   : > { %p1017_p6 = por %p90_p3, %p39_p0  ;;  %s952_s18 = smov [#allocation6]  }
   0xb   : > { %s1241_s15 = scalar_select %p1012_p4, 1, 0 }
   0xc   : > { %s1242_s16 = scalar_select %p1017_p6, 1, 0 }
   0xd   : > { %p1022_p8 = pnand %p693_p5, %p97_p7  ;;  %s110_s19 = sshll.u32 %s952_s18, 4  ;;  %s111_s19 = int_to_ptr.vmem [resolvable:$true] %s110_s19 }
   0xe   : > { %s1030_s20 = sadd.s32 1, %s950_s12   ;;  %s26_s24 = sadd.s32 1, %s946_s11 }
   0xf   : > { %s1243_s17 = scalar_select %p1022_p8, 1, 0 }
  0x10   : > { %p742_p10 = pneg %p1022_p8  ;;  %s23_s22 = ssub.s32 %s950_s12, %s1030_s20 }
  0x11   : > { %p1040_p12 = scmp.eq.s32.totalorder %s23_s22, 0  ;;  %s822_s27 = scalar_lea.hbm %s1236_s1, 64 }
  0x12   : > { %p1034_p11 = pnand %p742_p10, %p1238_p1  ;;  %p823_p0 = scmp.ne.s32.totalorder %s1236_s1, %s822_s27 }
  0x13   : > { %s1245_s23 = scalar_select %p1040_p12, 1, 0 }
  0x14   : > { %p824_p3 = pneg %p1034_p11  ;;  %p829_p10 = scmp.lt.u32.totalorder %s822_s27, %s1236_s1 }
  0x16   : > { %p825_p5 = pnand %p824_p3, %p823_p0 }
  0x18   : > { %p826_p7 = pneg %p825_p5 }
  0x1a   : > { %p831_p9 = pnand %p829_p10, %p826_p7 }
  0x1c   : > { %834 = shalt.err (!%p831_p9)
}
  0x1d   : > { %s835_s4 = scalar_lea.vmem %s111_s19, 64  ;;  %p843_p6 = scmp.lt.s32.totalorder %s111_s19, %s111_s19 }
  0x1e   : > { %p836_p1 = scmp.ne.s32.totalorder %s111_s19, %s835_s4  ;;  %p844_p4 = scmp.lt.s32.totalorder %s835_s4, %s835_s4 }
  0x20   : > { %p838_p2 = pnand %p836_p1, %p824_p3  ;;  %p845_p8 = por %p844_p4, %p843_p6 }
  0x22   : > { %p839_p13 = pneg %p838_p2 }
  0x24   : > { %p846_p12 = pnand %p845_p8, %p839_p13 }
  0x26   : > { %849 = shalt.err (!%p846_p12)
}
  0x27   : > { %745 = dma.hbm_to_vmem [thread:$0]  (!%p1034_p11), %s1236_s1, 64, %s111_s19, [#allocation7]  }
  0x28   : > { %p1246_p1 = scmp.ne.s32.totalorder %s1245_s23, 0  ;;  %p34_p2 = scmp.eq.s32.totalorder %s950_s12, 0 }
  0x29   : > { %p1247_p4 = scmp.ne.s32.totalorder %s946_s11, %s942_s10  ;;  %p1248_p6 = scmp.eq.s32.totalorder %s1003_s13, 1 }
  0x2a   : > { %s1066_s7 = scalar_select %p1246_p1, %s946_s11, %s26_s24  }
  0x2b   : > { %p1074_p8 = por %p1248_p6, %p1247_p4  ;;  %p755_p9 = scmp.lt.s32.totalorder %s950_s12, 2 }
  0x2c   : > { %s121_s14 = sand.u32 1, %s946_s11   ;;  %p1250_p12 = pmov %p1247_p4 }
  0x2d   : > { %s729_s18 = smul.u32 6, %s121_s14  ;;  %s122_s27 = scalar_lea.sflag [#allocation4], %s121_s14 }
  0x2e   : > { %p35_p13 = por %p34_p2, %p1250_p12  ;;  %s730_s21 = smul.u32 96, %s950_s12 }
  0x2f   : > { %s125_s25 = scalar_lea.vmem [#allocation3], %s729_s18  ;;  %s855_s3 = scalar_lea.hbm %s1235_s0, 192 }
  0x30   : > { %p1084_p0 = pnand %p755_p9, %p35_p13  ;;  %s1091_s24 = scalar_lea.hbm %s1235_s0, %s730_s21 }
  0x31   : > { %s133_s26 = sshll.u32 %s125_s25, 4  ;;  %s850_s28 = scalar_lea.hbm %s1091_s24, 96  ;;  %s1093_s26 = int_to_ptr.vmem [resolvable:$true] %s133_s26 }
  0x32   : > { %p851_p11 = scmp.ne.s32.totalorder %s1091_s24, %s850_s28  ;;  %p852_p3 = pneg %p1084_p0 }
  0x33   : > { %p856_p10 = scmp.lt.u32.totalorder %s1091_s24, %s1235_s0  ;;  %p857_p1 = scmp.lt.u32.totalorder %s855_s3, %s850_s28 }
  0x34   : > { %p853_p5 = pnand %p852_p3, %p851_p11  ;;  %p859_p4 = scmp.lt.u32.totalorder %s850_s28, %s1091_s24 }
  0x35   : > { %p858_p2 = por %p857_p1, %p856_p10 }
  0x36   : > { %p854_p7 = pneg %p853_p5 }
  0x37   : > { %p860_p6 = por %p859_p4, %p858_p2 }
  0x39   : > { %p861_p9 = pnand %p860_p6, %p854_p7 }
  0x3b   : > { %864 = shalt.err (!%p861_p9)
}
  0x3c   : > { %s865_s6 = scalar_lea.vmem %s1093_s26, 96  ;;  %s953_s14 = smov [#allocation3]  }
  0x3d   : > { %p866_p12 = scmp.ne.s32.totalorder %s1093_s26, %s865_s6  ;;  %s870_s18 = sshll.u32 %s953_s14, 4  ;;  %s871_s18 = int_to_ptr.vmem [resolvable:$false] %s870_s18 }
  0x3e   : > { %s872_s21 = scalar_lea.vmem %s871_s18, 192  ;;  %p873_p5 = scmp.lt.s32.totalorder %s1093_s26, %s871_s18 }
  0x3f   : > { %p868_p13 = pnand %p866_p12, %p852_p3  ;;  %p874_p10 = scmp.lt.s32.totalorder %s872_s21, %s865_s6 }
  0x41   : > { %p869_p11 = pneg %p868_p13  ;;  %p875_p1 = por %p874_p10, %p873_p5 }
  0x43   : > { %p876_p2 = pnand %p875_p1, %p869_p11 }
  0x45   : > { %879 = shalt.err (!%p876_p2)
}
  0x46   : > { %749 = dma.hbm_to_vmem [thread:$0]  (!%p1084_p0), %s1091_s24, 96, %s1093_s26, %s122_s27  }
  0x47   : > { %p1252_p7 = scmp.ne.s32.totalorder %s1243_s17, 0 }
  0x48   : > { %s1123_s19 = sand.u32 (!%p1252_p7), 1, %s942_s10   ;;  %p1253_p3 = scmp.ne.s32.totalorder (!%p1252_p7), %s1241_s15, 0 }
  0x49   : > { %142 = sbr.rel (%p1252_p7) target bundleno = 484 (0x1e4), region = 28  ;;  %s145_s25 = scalar_lea.sflag (!%p1252_p7), [#allocation4], %s1123_s19 }
  0x4a   : > { %s731_s23 = smul.u32 (!%p1252_p7), 6, %s1123_s19 }
  0x4c   : > { %s1127_s28 = scalar_lea.vmem (!%p1252_p7), [#allocation3], %s731_s23 }
  0x50   : > { %925 = dma.done.wait (%p1253_p3), %s145_s25, 96  }
  0x51   : > { %927 = vsyncadd (%p1253_p3), %s145_s25, 4294967200  ;;  %p1254_p0 = scmp.eq.s32.totalorder %s1003_s13, 0 }
  0x53   : > { %929 = dma.done.wait (%p1254_p0), [#allocation7], 64   ;;  %p1255_p4 = pmov %p1254_p0 }
  0x54   : > { %v187_v0 = vlaneseq  ;;  %v954_v1 = vmov 1983009808   ;;  %v228_v6 = vld [vmem:[%s1127_s28] sm:$0x3f]  ;;  %s955_s15 = smov 126   ;;  %s956_s17 = smov 127  }
  0x55   : > { %931 = vsyncadd (%p1255_p4), [#allocation7], 4294967232  ;;  %v185_v2 = vunpack.c.l.s4 %v954_v1  ;;  %v196_v7 = vld [vmem:[%s1127_s28] sm:$0x3f]  ;;  %v230_v12 = vcombine.high %v228_v6, %v228_v6  ;;  %s957_s22 = smov 110   ;;  %s958_s24 = smov 109  }
  0x56   : > { %v188_v3 = vshrl.u32 %v187_v0, 7  ;;  %v258_v8 = vld [vmem:[%s1127_s28] sm:$0x3f]  ;;  %v198_v14 = vcombine.low %v196_v7, %v196_v7  ;;  %vm194_vm0 = vcmask 254976   ;;  %v959_v24 = vmov 0.0   ;;  %s960_s26 = smov 108  }
  0x57   : > { %v186_v4 = vunpack.c.0.s8 %v185_v2  ;;  %v288_v11 = vld [vmem:[%s1127_s28] sm:$0x3f]  ;;  %v260_v21 = vcombine.low %v258_v8, %v258_v8  ;;  %719 = vmatprep.subr.bf16.mxu1 %v959_v24  ;;  %s961_s27 = smov 92   ;;  %s962_s29 = smov 91   ;;  %vm964_vm1 = vmmov 0   ;;  %v965_v42 = vmov 0  }
  0x58   : > { %v174_v13 = vld [vmem:[%s1127_s28] sm:$0x3f]  ;;  %v290_v17 = vcombine.high %v288_v11, %v288_v11  ;;  %s963_s30 = smov 90   ;;  %725 = vmatprep.mubr.msk.bf16.mxu1 %vm964_vm1, %v959_v24  ;;  %535 = vmatprep.mubr.bf16.mxu0 %v965_v42  ;;  %vm226_vm2 = vcmask 257026   ;;  %vm219_vm3 = vcmask 1043456   ;;  %vm252_vm4 = vcmask 1031168  }
  0x59   : > { %v1137_v5 = vsub.s32 %v186_v4, %v188_v3  ;;  %699 = vst.sshfl [vmem:[#allocation2] sm:$0xf pattern:$0x76325410] %v174_v13  ;;  %v176_v18 = vcombine.high %v174_v13, %v174_v13  ;;  %v318_v22 = vld [vmem:[%s1127_s28] sm:$0x3f] }
  0x5a   : > { %v320_v27 = vcombine.low %v318_v22, %v318_v22  ;;  %v348_v28 = vld [vmem:[%s1127_s28] sm:$0x3f]  ;;  %vm221_vm5 = vcmask 1039360   ;;  %vm312_vm6 = vcmask 891904   ;;  %vm282_vm7 = vcmask 900096   ;;  %s732_s3 = smul.u32 24, %s1123_s19 }
  0x5b   : > { %v237_v9 = vrot.slane %v228_v6, %v1137_v5  ;;  %v212_v10 = vrot.slane %v196_v7, %v1137_v5  ;;  %v274_v15 = vrot.slane %v258_v8, %v1137_v5  ;;  %v297_v16 = vrot.slane %v288_v11, %v1137_v5  ;;  %v378_v32 = vld [vmem:[%s1127_s28] sm:$0x3f]  ;;  %s733_s4 = smul.u32 384, %s1003_s13  ;;  %s598_s13 = scalar_lea.sflag [#allocation5], %s1123_s19 }
  0x5c   : > { %v244_v19 = vrot.slane %v230_v12, %v1137_v5  ;;  %v205_v20 = vrot.slane %v198_v14, %v1137_v5  ;;  %v190_v23 = vrot.slane %v176_v18, %v1137_v5  ;;  %v304_v25 = vrot.slane %v290_v17, %v1137_v5  ;;  %v408_v36 = vld [vmem:[%s1127_s28] sm:$0x3f]  ;;  %s172_s5 = scalar_lea.vmem [#allocation8], %s732_s3  ;;  %s966_s25 = smov [#allocation8]  }
  0x5d   : > { %245 = vrot.lane.b32.xlu1 %v237_v9, %s955_s15  ;;  %215 = vrot.lane.b32.xlu0 %v212_v10, %s956_s17  ;;  %v267_v26 = vrot.slane %v260_v21, %v1137_v5  ;;  %v334_v29 = vrot.slane %v318_v22, %v1137_v5  ;;  %v327_v30 = vrot.slane %v320_v27, %v1137_v5  ;;  %vm342_vm8 = vcmask 883712   ;;  %s612_s6 = sshll.u32 %s172_s5, 4  ;;  %s1191_s21 = scalar_lea.hbm %s1237_s2, %s733_s4  ;;  %s1193_s6 = int_to_ptr.vmem [resolvable:$true] %s612_s6 }
  0x5e   : > { %195 = vst.msk [vmem:[#allocation2 + $0x8] sm:$0x3] %vm194_vm0, %v190_v23  ;;  %v350_v31 = vcombine.high %v348_v28, %v348_v28  ;;  %v357_v34 = vrot.slane %v348_v28, %v1137_v5  ;;  %v380_v35 = vcombine.low %v378_v32, %v378_v32  ;;  %v394_v37 = vrot.slane %v378_v32, %v1137_v5  ;;  %s880_s23 = scalar_lea.vmem %s1193_s6, 384  ;;  %s884_s28 = sshll.u32 %s966_s25, 4  ;;  %s885_s28 = int_to_ptr.vmem [resolvable:$false] %s884_s28 }
  0x5f   : > { %v410_v39 = vcombine.high %v408_v36, %v408_v36  ;;  %v417_v41 = vrot.slane %v408_v36, %v1137_v5  ;;  %vm372_vm9 = vcmask 752640   ;;  %vm402_vm10 = vcmask 744448   ;;  %p881_p6 = scmp.ne.s32.totalorder %s1193_s6, %s880_s23  ;;  %p887_p13 = scmp.lt.s32.totalorder %s1193_s6, %s885_s28 }
  0x60   : > { %v364_v33 = vrot.slane %v350_v31, %v1137_v5  ;;  %v387_v38 = vrot.slane %v380_v35, %v1137_v5  ;;  %vm432_vm11 = vcmask 736256   ;;  %vm493_vm12 = vcmask 1041408  }
  0x61   : > { %277 = vrot.lane.b32.xlu1 %v274_v15, %s957_s22  ;;  %305 = vrot.lane.b32.xlu0 %v297_v16, %s958_s24  ;;  %v424_v40 = vrot.slane %v410_v39, %v1137_v5  ;;  %v438_v39 = vld [vmem:[#allocation6] sm:$0xf]  ;;  %vm489_vm13 = vcmask 293888   ;;  %vm595_vm15 = vcmask 261120   ;;  %p882_p9 = pnand %p881_p6, %p1074_p8 }
  0x63   : > { %p883_p12 = pneg %p882_p9 }
  0x65   : > { %247 = vrot.lane.b32.xlu1 %v244_v19, %s955_s15  ;;  %213 = vrot.lane.b32.xlu0 %v205_v20, %s956_s17  ;;  %s886_s15 = scalar_lea.vmem %s885_s28, 768 }
  0x66   : > { %p888_p11 = scmp.lt.s32.totalorder %s886_s15, %s880_s23 }
  0x68   : > { %p889_p5 = por %p888_p11, %p887_p13 }
  0x69   : > { %307 = vrot.lane.b32.xlu1 %v304_v25, %s958_s24  ;;  %275 = vrot.lane.b32.xlu0 %v267_v26, %s957_s22 }
  0x6a   : > { %p890_p10 = pnand %p889_p5, %p883_p12 }
  0x6d   : > { %337 = vrot.lane.b32.xlu1 %v334_v29, %s960_s26  ;;  %335 = vrot.lane.b32.xlu0 %v327_v30, %s960_s26 }
  0x71   : > { %367 = vrot.lane.b32.xlu1 %v364_v33, %s961_s27  ;;  %365 = vrot.lane.b32.xlu0 %v357_v34, %s961_s27 }
  0x75   : > { %397 = vrot.lane.b32.xlu1 %v394_v37, %s962_s29  ;;  %395 = vrot.lane.b32.xlu0 %v387_v38, %s962_s29 }
  0x79   : > { %427 = vrot.lane.b32.xlu1 %v424_v40, %s963_s30  ;;  %425 = vrot.lane.b32.xlu0 %v417_v41, %s963_s30 }
  0xcf   : > { %v246_v43 = vpop.permute.xlu1 %245  ;;  %v216_v44 = vpop.permute.xlu0 %215 }
  0xd0   : > { %227 = vst.msk [vmem:[#allocation2 + $0x8] sm:$0xc] %vm226_vm2, %v216_v44  ;;  %v249_v49 = vrot.slane %v246_v43, 4  ;;  %v218_v50 = vrot.slane %v216_v44, 4 }
  0xd3   : > { %v278_v45 = vpop.permute.xlu1 %277  ;;  %v306_v46 = vpop.permute.xlu0 %305 }
  0xd4   : > { %287 = vst.msk [vmem:[#allocation2 + $0x14] sm:$0xc] %vm226_vm2, %v278_v45  ;;  %v280_v59 = vrot.slane %v278_v45, 4  ;;  %v309_v60 = vrot.slane %v306_v46, 4 }
  0xd7   : > { %v248_v47 = vpop.permute.xlu1 %247  ;;  %v214_v48 = vpop.permute.xlu0 %213 }
  0xd8   : > { %v250_v51 = vrot.slane %v248_v47, 4  ;;  %257 = vst.msk [vmem:[#allocation2 + $0x14] sm:$0x3] %vm194_vm0, %v248_v47  ;;  %v217_v52 = vrot.slane %v214_v48, 4 }
  0xda   : > { %v251_v53 = vsel %vm219_vm3, %v249_v49, %v250_v51  ;;  %v220_v54 = vsel %vm219_vm3, %v217_v52, %v218_v50 }
  0xdb   : > { %v253_v55 = vsel %vm252_vm4, %v246_v43, %v251_v53  ;;  %v222_v56 = vsel %vm221_vm5, %v214_v48, %v220_v54  ;;  %v308_v57 = vpop.permute.xlu1 %307  ;;  %v276_v58 = vpop.permute.xlu0 %275 }
  0xdc   : > { %256 = vst [vmem:[#allocation2 + $0xc] sm:$0x33] %v253_v55  ;;  %225 = vst [vmem:[#allocation2] sm:$0xcc] %v222_v56  ;;  %v310_v61 = vrot.slane %v308_v57, 4  ;;  %v279_v62 = vrot.slane %v276_v58, 4 }
  0xdd   : > { %317 = vst.msk [vmem:[#allocation2 + $0x20] sm:$0x3] %vm194_vm0, %v308_v57 }
  0xde   : > { %v311_v63 = vsel %vm219_vm3, %v309_v60, %v310_v61  ;;  %v281_v0 = vsel %vm219_vm3, %v279_v62, %v280_v59 }
  0xdf   : > { %v313_v1 = vsel %vm312_vm6, %v306_v46, %v311_v63  ;;  %v283_v2 = vsel %vm282_vm7, %v276_v58, %v281_v0  ;;  %v338_v3 = vpop.permute.xlu1 %337  ;;  %v336_v4 = vpop.permute.xlu0 %335  ;;  %v812_v5 = vld [vmem:[#allocation2 + $0x8] ss:$12 sps:$4 sm:$0xff]  }
  0xe0   : > { %316 = vst [vmem:[#allocation2 + $0x18] sm:$0x33] %v313_v1  ;;  %286 = vst [vmem:[#allocation2 + $0xc] sm:$0xcc] %v283_v2  ;;  %v340_v6 = vrot.slane %v338_v3, 4  ;;  %v339_v7 = vrot.slane %v336_v4, 4  ;;  %720 = vmatpush3.bf16.msra.mxu1 %v812_v5 }
  0xe1   : > { %347 = vst.msk [vmem:[#allocation2 + $0x20] sm:$0xc] %vm226_vm2, %v338_v3  ;;  %721 = vmatprep.subr.bf16.mxu1 %v959_v24 }
  0xe2   : > { %v341_v8 = vsel %vm219_vm3, %v339_v7, %v340_v6 }
  0xe3   : > { %v343_v9 = vsel %vm342_vm8, %v336_v4, %v341_v8  ;;  %v368_v10 = vpop.permute.xlu1 %367  ;;  %v366_v11 = vpop.permute.xlu0 %365  ;;  %v439_v15 = vld [vmem:[#allocation2] sm:$0xff] }
  0xe4   : > { %346 = vst [vmem:[#allocation2 + $0x18] sm:$0xcc] %v343_v9  ;;  %v370_v12 = vrot.slane %v368_v10, 4  ;;  %377 = vst.msk [vmem:[#allocation2 + $0x2c] sm:$0x3] %vm194_vm0, %v368_v10  ;;  %v369_v13 = vrot.slane %v366_v11, 4 }
  0xe6   : > { %v371_v14 = vsel %vm219_vm3, %v369_v13, %v370_v12 }
  0xe7   : > { %v373_v16 = vsel %vm372_vm9, %v366_v11, %v371_v14  ;;  %v398_v17 = vpop.permute.xlu1 %397  ;;  %v396_v18 = vpop.permute.xlu0 %395  ;;  %v441_v19 = vld [vmem:[#allocation2 + $0xc] sm:$0xff] }
  0xe8   : > { %v813_v20 = vld [vmem:[#allocation2 + $0x4] ss:$12 sps:$4 sm:$0xff]   ;;  %376 = vst [vmem:[#allocation2 + $0x24] sm:$0x33] %v373_v16  ;;  %v400_v21 = vrot.slane %v398_v17, 4  ;;  %v399_v22 = vrot.slane %v396_v18, 4  ;;  %v700_v23 = vcombine.low %v439_v15, %v441_v19 }
  0xe9   : > { %407 = vst.msk [vmem:[#allocation2 + $0x2c] sm:$0xc] %vm226_vm2, %v398_v17  ;;  %503 = vmatprep.subr.bf16.mxu0 %v813_v20 }
  0xea   : > { %v401_v25 = vsel %vm219_vm3, %v399_v22, %v400_v21  ;;  %504 = vmatpush1.bf16.msra.mxu0 %v700_v23 }
  0xeb   : > { %v403_v26 = vsel %vm402_vm10, %v396_v18, %v401_v25  ;;  %v428_v27 = vpop.permute.xlu1 %427  ;;  %v426_v28 = vpop.permute.xlu0 %425 }
  0xec   : > { %406 = vst [vmem:[#allocation2 + $0x24] sm:$0xcc] %v403_v26  ;;  %v430_v29 = vrot.slane %v428_v27, 4  ;;  %437 = vst.msk [vmem:[#allocation2 + $0x38] sm:$0x3] %vm194_vm0, %v428_v27  ;;  %v429_v30 = vrot.slane %v426_v28, 4 }
  0xee   : > { %v431_v31 = vsel %vm219_vm3, %v429_v30, %v430_v29 }
  0xef   : > { %v433_v32 = vsel %vm432_vm11, %v426_v28, %v431_v31 }
  0xf0   : > { %v815_v33 = vld [vmem:[#allocation2 + $0x20] ss:$12 sps:$4 sm:$0xff]   ;;  %436 = vst [vmem:[#allocation2 + $0x30] sm:$0x33] %v433_v32 }
  0xf1   : > { %722 = vmatpush3.bf16.msra.mxu1 %v815_v33 }
  0xf2   : > { %723 = vmatprep.subr.bf16.mxu1 %v959_v24 }
  0xf3   : > { %v816_v34 = vld [vmem:[#allocation2 + $0x1c] ss:$12 sps:$4 sm:$0xff]   ;;  %v818_v35 = vld [vmem:[#allocation2 + $0x18] ss:$12 sps:$4 sm:$0xff]  }
  0xf4   : > { %v819_v36 = vld [vmem:[#allocation2 + $0x38] ss:$0 sps:$4 sm:$0x33]   ;;  %505 = vmatprep.subr.bf16.mxu0 %v816_v34 }
  0xf5   : > { %506 = vmatpush1.bf16.msra.mxu0 %v818_v35  ;;  %v501_v37 = vsel %vm493_vm12, %v819_v36, 0 }
  0xf6   : > { %724 = vmatpush3.bf16.msra.mxu1 %v501_v37 }
  0xf7   : > { %v447_v38 = vld [vmem:[#allocation2 + $0x30] sm:$0x33] }
  0xf8   : > { %v707_v40 = vcombine.high %v447_v38, %v447_v38  ;;  %v706_v41 = vcombine.low %v447_v38, %v447_v38 }
  0xf9   : > { %726 = vmatmul.mubr.msk.bf16.vlgmr.msra.gmra.mrb[0].mxu1 %vm489_vm13, %v438_v39 }
  0xfa   : > { %709 = vmatprep.subr.msk.bf16.mxu0 %vm493_vm12, %v707_v40  ;;  %v495_v42 = vsel %vm493_vm12, %v706_v41, 0 }
  0xfb   : > { %508 = vmatpush1.bf16.msra.mxu0 %v495_v42 }
  0xfe   : > { %710 = vmatmul.mubr.msk.bf16.vlgmr.msra.gmra.mrb[0].mxu0 %vm489_vm13, %v438_v39 }
 0x1cc   : > { %v578_v24 = vpop.f32.mrb[0].mxu1 }
 0x1cd   : > { %vm586_vm14 = vcmp.gt.f32.partialorder %v578_v24, 0.0  ;;  %v589_v43 = vmul.f32 0.1, %v578_v24  ;;  %v727_v44 = vpop.f32.mrb[1].mxu1 }
 0x1ce   : > { %v581_v45 = vpop.f32.mrb[2].mxu1 }
 0x1cf   : > { %v592_v46 = vsel %vm586_vm14, %v578_v24, %v589_v43  ;;  %v728_v47 = vpop.f32.mrb[3].mxu1 }
 0x1d0   : > { %596 = vst.msk [vmem:[%s172_s5 + $0x10] sm:$0xff] %vm595_vm15, %v592_v46 }
 0x1d1   : > { %v537_v48 = vpop.f32.mrb[0].mxu0 }
 0x1d2   : > { %vm584_vm0 = vcmp.gt.f32.partialorder %v537_v48, 0.0  ;;  %v587_v49 = vmul.f32 0.1, %v537_v48  ;;  %v539_v50 = vpop.f32.mrb[1].mxu0 }
 0x1d3   : > { %vm585_vm1 = vcmp.gt.f32.partialorder %v539_v50, 0.0  ;;  %v588_v51 = vmul.f32 0.1, %v539_v50  ;;  %v541_v52 = vpop.f32.mrb[2].mxu0 }
 0x1d4   : > { %v590_v53 = vsel %vm584_vm0, %v537_v48, %v587_v49  ;;  %v542_v54 = vpop.f32.mrb[3].mxu0 }
 0x1d5   : > { %593 = vst [vmem:[%s172_s5] sm:$0xff] %v590_v53  ;;  %v591_v55 = vsel %vm585_vm1, %v539_v50, %v588_v51 }
 0x1d6   : > { %594 = vst [vmem:[%s172_s5 + $0x8] sm:$0xff] %v591_v55 }
 0x1d7   : > { %893 = shalt.err (!%p890_p10)
}
 0x1d8   : > { %s894_s19 = scalar_lea.hbm %s1191_s21, 384  ;;  %s898_s24 = scalar_lea.hbm %s1237_s2, 768 }
 0x1d9   : > { %p895_p1 = scmp.ne.s32.totalorder %s1191_s21, %s894_s19  ;;  %p899_p3 = scmp.lt.u32.totalorder %s1191_s21, %s1237_s2 }
 0x1da   : > { %p900_p0 = scmp.lt.u32.totalorder %s898_s24, %s894_s19  ;;  %p902_p6 = scmp.lt.u32.totalorder %s894_s19, %s1191_s21 }
 0x1db   : > { %p896_p2 = pnand %p895_p1, %p1074_p8 }
 0x1dc   : > { %p901_p4 = por %p900_p0, %p899_p3 }
 0x1dd   : > { %p897_p7 = pneg %p896_p2 }
 0x1de   : > { %p903_p9 = por %p902_p6, %p901_p4 }
 0x1e0   : > { %p904_p12 = pnand %p903_p9, %p897_p7 }
 0x1e2   : > { %907 = shalt.err (!%p904_p12)
}
 0x1e3   : > { %740 = dma.vmem_to_hbm [thread:$0]  (%p1074_p8), %s1193_s6, 384, %s1191_s21, %s598_s13  }
 0x1e4 PF: > { %s624_s29 = sand.u32 1, %s938_s9   ;;  %p1256_p13 = scmp.ne.s32.totalorder %s1242_s16, 0 }
 0x1e5   : > { %p1257_p11 = scmp.ge.s32.totalorder %s950_s12, 2  ;;  %s625_s30 = scalar_lea.sflag [#allocation5], %s624_s29 }
 0x1e7   : > { %p751_p5 = pnand %p1257_p11, %p1256_p13 }
 0x1e9   : > { %933 = dma.done.wait (!%p751_p5), %s625_s30, 384  }
 0x1ea   : > { %935 = vsyncadd (!%p751_p5), %s625_s30, 4294966912  ;;  %p16_p10 = scmp.ge.s32.totalorder %s1030_s20, 4   ;;  %s1258_s9 = smov %s942_s10 }
 0x1eb   : > { %s1259_s10 = smov %s946_s11  ;;  %s1260_s11 = smov %s1066_s7 }
 0x1ec   : > { %s1261_s12 = smov %s1030_s20  ;;  %18 = sbr.rel (!%p16_p10) target bundleno = 6 (0x6), region = 77 }
 0x1f3   :  { %630 = vsyncpa [#allocation4], 1 }
 0x1f4   :  { %632 = vsyncpa [#allocation4 + $0x1], 1 }
 0x1f5   :  { %633 = vsyncpa [#allocation7], 1 }
 0x1f6   :  { %634 = vsyncpa [#allocation5], 1 }
 0x1f7   :  { %636 = vsyncpa [#allocation5 + $0x1], 1 }

</bundles_post_ra>
